<compile_context>
chip_gen: v7x
topology: tpu7x:2x2x1
jax: 0.10.0
libtpu: 0.0.40
codegen_flags: <defaults>
</compile_context>

<pallas_src>
import functools

import jax
import jax.numpy as jnp
from jax.experimental import pallas as pl
from jax.experimental.pallas import tpu as pltpu

_LANE = 1024           # lane-dense last dim (multiple of 128)
_MAX_BLOCK_ROWS = 256  # (256, 1024) f32 block = 1 MiB -> safe for v7x VMEM


def _gaussian_noise_kernel_tpu(seed_ref, x_ref, o_ref, *, mean, std):
    """TPU path: in-kernel hardware-PRNG normal draw, fused add."""
    # Decorrelate the PRNG per grid step (kernel body runs once per tile).
    pltpu.prng_seed(seed_ref[0] + pl.program_id(0))
    z = pltpu.stateful_normal(x_ref.shape, jnp.float32)
    noise = mean + std * z
    # Add in f32, cast once at the end.
    o_ref[...] = (x_ref[...].astype(jnp.float32) + noise).astype(o_ref.dtype)


def _add_noise_kernel(x_ref, z_ref, o_ref, *, mean, std):
    """Portable fallback: noise z drawn outside, fused scale/shift/add here."""
    noise = mean + std * z_ref[...].astype(jnp.float32)
    o_ref[...] = (x_ref[...].astype(jnp.float32) + noise).astype(o_ref.dtype)


def gaussian_noise(x, seed, *, mean=0.0, std=0.05):
    """Pallas equivalent of GaussianNoise(mean, std).forward(x).

    x:    float array (any shape, e.g. NCHW).
    seed: int seed (torch.randn_like uses torch's global RNG; here explicit).
    """
    orig_shape = x.shape
    orig_dtype = x.dtype
    total = int(x.size)

    # Lane-dense 2-D layout (rows, 1024); pad the tail so every block is full.
    rows = max(1, (total + _LANE - 1) // _LANE)
    if rows <= _MAX_BLOCK_ROWS:
        block_rows = rows                      # full-dim block is always legal
    else:
        block_rows = _MAX_BLOCK_ROWS           # multiple of 8 -> legal tiling
        rows = ((rows + block_rows - 1) // block_rows) * block_rows
    padded_total = rows * _LANE

    x_flat = x.reshape(-1)
    if padded_total != total:
        x_flat = jnp.pad(x_flat, (0, padded_total - total))
    x2d = x_flat.reshape(rows, _LANE)

    n_blocks = rows // block_rows
    blk = pl.BlockSpec((block_rows, _LANE), lambda i, *_: (i, 0))

    if jax.default_backend() == "tpu":
        kernel = functools.partial(
            _gaussian_noise_kernel_tpu, mean=float(mean), std=float(std))
        seed_arr = jnp.asarray([seed], dtype=jnp.int32)
        out2d = pl.pallas_call(
            kernel,
            out_shape=jax.ShapeDtypeStruct(x2d.shape, x2d.dtype),
            grid_spec=pltpu.PrefetchScalarGridSpec(
                num_scalar_prefetch=1,
                grid=(n_blocks,),
                in_specs=[blk],
                out_specs=blk,
            ),
            compiler_params=pltpu.CompilerParams(
                dimension_semantics=("parallel",)),
        )(seed_arr, x2d)
    else:
        # Non-TPU / interpret backends: TPU PRNG primitives cannot lower there,
        # so draw the standard normals with jax.random and fuse the rest.
        kernel = functools.partial(
            _add_noise_kernel, mean=float(mean), std=float(std))
        z2d = jax.random.normal(
            jax.random.PRNGKey(int(seed)), x2d.shape, dtype=jnp.float32)
        out2d = pl.pallas_call(
            kernel,
            out_shape=jax.ShapeDtypeStruct(x2d.shape, x2d.dtype),
            grid=(n_blocks,),
            in_specs=[blk, blk],
            out_specs=blk,
        )(x2d, z2d)

    out_flat = out2d.reshape(-1)
    if padded_total != total:
        out_flat = out_flat[:total]
    return out_flat.reshape(orig_shape).astype(orig_dtype)


if __name__ == "__main__":
    key = jax.random.PRNGKey(0)
    # Small NCHW input consistent with typical use of the module.
    x = jax.random.normal(key, (2, 4, 16, 16), dtype=jnp.float32)

    mean, std = 0.0, 0.05
    out = gaussian_noise(x, seed=42, mean=mean, std=std)
    out = jax.block_until_ready(out)

    # Sanity checks: shape/dtype preserved, noise small with ~N(0, 0.05^2) stats.
    assert out.shape == x.shape and out.dtype == x.dtype
    noise = out - x
    assert bool(jnp.all(jnp.isfinite(noise)))
    assert float(jnp.max(jnp.abs(noise))) < 1.0
    assert abs(float(jnp.mean(noise)) - mean) < 0.02
    assert abs(float(jnp.std(noise)) - std) < 0.02

    print("KERNEL_OK")
</pallas_src>

<mosaic_0001>
module attributes {stable_mosaic.version = 11 : i64} {
  func.func @_add_noise_kernel(%arg0: i32, %arg1: memref<2x1024xf32, #tpu.memory_space<vmem>>, %arg2: memref<2x1024xf32, #tpu.memory_space<vmem>>, %arg3: memref<2x1024xf32, #tpu.memory_space<vmem>>) attributes {dimension_semantics = [#tpu.dimension_semantics<arbitrary>], iteration_bounds = array<i64: 1>, scalar_prefetch = 0 : i64, scratch_operands = 0 : i64, tpu.core_type = #tpu.core_type<tc>, window_params = [{transform_indices = @transform_0, window_bounds = array<i64: 2, 1024>}, {transform_indices = @transform_1, window_bounds = array<i64: 2, 1024>}, {transform_indices = @transform_2, window_bounds = array<i64: 2, 1024>}]} {
    %c0 = arith.constant 0 : index
    %c0_0 = arith.constant 0 : index
    %0 = vector.load %arg2[%c0, %c0_0] : memref<2x1024xf32, #tpu.memory_space<vmem>>, vector<2x1024xf32>
    %cst = arith.constant 5.000000e-02 : f32
    %1 = vector.broadcast %cst : f32 to vector<2x1024xf32>
    %2 = arith.mulf %1, %0 : vector<2x1024xf32>
    %cst_1 = arith.constant 0.000000e+00 : f32
    %3 = vector.broadcast %cst_1 : f32 to vector<2x1024xf32>
    %4 = arith.addf %3, %2 : vector<2x1024xf32>
    %c0_2 = arith.constant 0 : index
    %c0_3 = arith.constant 0 : index
    %5 = vector.load %arg1[%c0_2, %c0_3] : memref<2x1024xf32, #tpu.memory_space<vmem>>, vector<2x1024xf32>
    %6 = arith.addf %5, %4 : vector<2x1024xf32>
    %c0_4 = arith.constant 0 : index
    %c0_5 = arith.constant 0 : index
    %7 = vector.load %arg3[%c0_4, %c0_5] : memref<2x1024xf32, #tpu.memory_space<vmem>>, vector<2x1024xf32>
    tpu.vector_store %arg3[%c0_4, %c0_5], %6 {strides = array<i32>} : memref<2x1024xf32, #tpu.memory_space<vmem>>, vector<2x1024xf32>,
    return
  }
  func.func @transform_0(%arg0: i32) -> (i32, i32) {
    %c0_i32 = arith.constant 0 : i32
    %c0_i32_0 = arith.constant 0 : i32
    return %arg0, %c0_i32 : i32, i32
  }
  func.func @transform_1(%arg0: i32) -> (i32, i32) {
    %c0_i32 = arith.constant 0 : i32
    %c0_i32_0 = arith.constant 0 : i32
    return %arg0, %c0_i32 : i32, i32
  }
  func.func @transform_2(%arg0: i32) -> (i32, i32) {
    %c0_i32 = arith.constant 0 : i32
    %c0_i32_0 = arith.constant 0 : i32
    return %arg0, %c0_i32 : i32, i32
  }
}

</mosaic_0001>

<bundles_post_ra>
// kernel: tpu_custom_call.1
= control target key start
LH: loop header
LB: loop body
LE: loop exit
PB: predicated region body
PF: predicated region fallthrough
CT: control target
= control target key end

     0   :  { %7 = vsyncpa [#allocation3], 0  ;;  %s193_s0 = inlined_call_operand.hbm [shape: f32[2,1024], index: 0, kind: input, shape index: {}]   ;;  %s194_s1 = inlined_call_operand.hbm [shape: f32[2,1024], index: 1, kind: input, shape index: {}]   ;;  %s195_s2 = inlined_call_operand.hbm [shape: f32[2,1024], index: 2, kind: output, shape index: {}]  }
   0x1   :  { %8 = vsyncpa [#allocation6], 0 }
   0x2   :  { %9 = vsyncpa [#allocation4], 0  ;;  %s139_s9 = smov [#allocation2]   ;;  %s140_s11 = smov [#allocation5]  }
   0x3   :  { %s16_s10 = sshll.u32 %s139_s9, 4  ;;  %s26_s12 = sshll.u32 %s140_s11, 4  ;;  %s17_s10 = int_to_ptr.vmem [resolvable:$true] %s16_s10  ;;  %s27_s12 = int_to_ptr.vmem [resolvable:$true] %s26_s12 }
   0x4   :  { %s67_s15 = scalar_lea.hbm %s193_s0, 256 }
   0x5   :  { %p68_p0 = scmp.ne.s32.totalorder %s193_s0, %s67_s15  ;;  %p71_p1 = scmp.lt.u32.totalorder %s67_s15, %s193_s0 }
   0x7   :  { %p73_p2 = pnand %p71_p1, %p68_p0 }
   0x9   :  { %76 = shalt.err (!%p73_p2)
}
   0xa   :  { %s77_s20 = scalar_lea.vmem %s17_s10, 256  ;;  %p82_p4 = scmp.lt.s32.totalorder %s17_s10, %s17_s10 }
   0xb   :  { %p78_p3 = scmp.ne.s32.totalorder %s17_s10, %s77_s20  ;;  %p83_p5 = scmp.lt.s32.totalorder %s77_s20, %s77_s20 }
   0xd   :  { %p84_p6 = por %p83_p5, %p82_p4 }
   0xf   :  { %p85_p7 = pnand %p84_p6, %p78_p3 }
  0x11   :  { %88 = shalt.err (!%p85_p7)
}
  0x12   :  { %19 = dma.hbm_to_vmem [thread:$0]  %s193_s0, 256, %s17_s10, [#allocation3]  }
  0x13   :  { %s89_s25 = scalar_lea.hbm %s194_s1, 256 }
  0x14   :  { %p90_p8 = scmp.ne.s32.totalorder %s194_s1, %s89_s25  ;;  %p93_p9 = scmp.lt.u32.totalorder %s89_s25, %s194_s1 }
  0x16   :  { %p95_p10 = pnand %p93_p9, %p90_p8 }
  0x18   :  { %98 = shalt.err (!%p95_p10)
}
  0x19   :  { %s99_s30 = scalar_lea.vmem %s27_s12, 256  ;;  %p104_p12 = scmp.lt.s32.totalorder %s27_s12, %s27_s12 }
  0x1a   :  { %p100_p11 = scmp.ne.s32.totalorder %s27_s12, %s99_s30  ;;  %p105_p13 = scmp.lt.s32.totalorder %s99_s30, %s99_s30 }
  0x1c   :  { %p106_p0 = por %p105_p13, %p104_p12 }
  0x1e   :  { %p107_p1 = pnand %p106_p0, %p100_p11 }
  0x20   :  { %110 = shalt.err (!%p107_p1)
}
  0x21   :  { %29 = dma.hbm_to_vmem [thread:$0]  %s194_s1, 256, %s27_s12, [#allocation6]  }
  0x22   :  { %133 = dma.done.wait [#allocation3], 256  }
  0x23   :  { %134 = vsyncadd [#allocation3], 4294967040 }
  0x24   :  { %135 = dma.done.wait [#allocation6], 256  }
  0x25   :  { %136 = vsyncadd [#allocation6], 4294967040  ;;  %v36_v0 = vld [vmem:[#allocation5] sm:$0xff]  ;;  %v42_v1 = vld [vmem:[#allocation2] sm:$0xff]  ;;  %s141_s4 = smov [#allocation7]  }
  0x26   :  { %v37_v2 = vld [vmem:[#allocation5 + $0x8] sm:$0xff]  ;;  %s54_s5 = sshll.u32 %s141_s4, 4  ;;  %v38_v3 = vmul.f32 0.05, %v36_v0  ;;  %v43_v5 = vld [vmem:[#allocation2 + $0x8] sm:$0xff]  ;;  %s55_s5 = int_to_ptr.vmem [resolvable:$true] %s54_s5 }
  0x27   :  { %v39_v4 = vmul.f32 0.05, %v37_v2  ;;  %s111_s6 = scalar_lea.vmem %s55_s5, 256  ;;  %p116_p3 = scmp.lt.s32.totalorder %s55_s5, %s55_s5 }
  0x28   :  { %v44_v6 = vadd.f32 %v42_v1, %v38_v3  ;;  %p112_p2 = scmp.ne.s32.totalorder %s55_s5, %s111_s6  ;;  %p117_p4 = scmp.lt.s32.totalorder %s111_s6, %s111_s6 }
  0x29   :  { %v45_v7 = vadd.f32 %v43_v5, %v39_v4 }
  0x2a   :  { %46 = vst [vmem:[#allocation7] sm:$0xff] %v44_v6  ;;  %p118_p5 = por %p117_p4, %p116_p3 }
  0x2b   :  { %47 = vst [vmem:[#allocation7 + $0x8] sm:$0xff] %v45_v7 }
  0x2c   :  { %p119_p6 = pnand %p118_p5, %p112_p2 }
  0x2e   :  { %122 = shalt.err (!%p119_p6)
}
  0x2f   :  { %s123_s8 = scalar_lea.hbm %s195_s2, 256 }
  0x30   :  { %p124_p7 = scmp.ne.s32.totalorder %s195_s2, %s123_s8  ;;  %p127_p8 = scmp.lt.u32.totalorder %s123_s8, %s195_s2 }
  0x32   :  { %p129_p9 = pnand %p127_p8, %p124_p7 }
  0x34   :  { %132 = shalt.err (!%p129_p9)
}
  0x35   :  { %57 = dma.vmem_to_hbm [thread:$0]  %s55_s5, 256, %s195_s2, [#allocation4]  }
  0x36   :  { %137 = dma.done.wait [#allocation4], 256  }
  0x37   :  { %138 = vsyncadd [#allocation4], 4294967040 }
  0x38   :  { %61 = vsyncpa [#allocation3], 1 }
  0x39   :  { %62 = vsyncpa [#allocation6], 1 }
  0x3a   :  { %63 = vsyncpa [#allocation4], 1 }

</bundles_post_ra>
